<compile_context>
chip_gen: v6e
topology: v6e:2x2x1
jax: 0.10.0
libtpu: 0.0.40
codegen_flags: <defaults>
</compile_context>

<pallas_src>
import jax
import jax.numpy as jnp
from jax.experimental import pallas as pl
from jax.experimental.pallas import tpu as pltpu


def _round_up(x, m):
    return (x + m - 1) // m * m


# ---------------------------------------------------------------------------
# Kernels
# ---------------------------------------------------------------------------

def _weighted_sum_dense_kernel(w_ref, g_ref, o_ref):
    # w_ref: (1, N) f32 in SMEM (scalar reads)
    # g_ref: (N, St, 128) VMEM tile of graph_embedding (native dtype)
    # o_ref: (St, 128) f32 VMEM tile of the output
    n = g_ref.shape[0]
    acc = w_ref[0, 0] * g_ref[0].astype(jnp.float32)
    for i in range(1, n):                      # N tiny & static -> unrolled
        acc = acc + w_ref[0, i] * g_ref[i].astype(jnp.float32)
    o_ref[...] = acc


def _weighted_sum_rows_kernel(w_ref, g_ref, o_ref):
    # w_ref: (1, N) f32 in SMEM; g_ref: (N, TD) VMEM; o_ref: (1, TD) f32 VMEM
    n = g_ref.shape[0]
    acc = w_ref[0, 0] * g_ref[0:1, :].astype(jnp.float32)
    for i in range(1, n):
        acc = acc + w_ref[0, i] * g_ref[i:i + 1, :].astype(jnp.float32)
    o_ref[...] = acc


# ---------------------------------------------------------------------------
# Wrappers
# ---------------------------------------------------------------------------

def _cost(n, d, in_dtype):
    return pl.CostEstimate(
        flops=2 * n * d,
        transcendentals=0,
        bytes_accessed=n * d * jnp.dtype(in_dtype).itemsize + d * 4 + n * 4,
    )


def _forward_dense(weight, g, n, d):
    s = d // 128
    g3 = g.reshape(n, s, 128)                  # free row-major reshape, native dtype
    if s <= 16:
        st = s                                 # single full-extent block
    else:
        # >=2 grid steps (v7x megacore) capped at 1024 sublane-rows
        # (= 131072 lanes, ~1.5 MiB per f32 input block; a few MiB once
        # double-buffered -> fits v7x's 64 MiB VMEM with large margin).
        st = min(1024, _round_up(pl.cdiv(s, 2), 8))
    grid = (pl.cdiv(s, st),)
    out = pl.pallas_call(
        _weighted_sum_dense_kernel,
        out_shape=jax.ShapeDtypeStruct((s, 128), jnp.float32),
        grid=grid,
        in_specs=[
            pl.BlockSpec(memory_space=pltpu.MemorySpace.SMEM),   # (1, N) weights
            pl.BlockSpec((n, st, 128), lambda i: (0, i, 0)),
        ],
        out_specs=pl.BlockSpec((st, 128), lambda i: (i, 0)),
        compiler_params=pltpu.CompilerParams(dimension_semantics=("parallel",)),
        cost_estimate=_cost(n, d, g.dtype),
    )(weight, g3)
    return out.reshape(1, d)


def _forward_rows(weight, g, n, d, lane_tile):
    # D not a multiple of 128: keep the (N, D) lane layout; the trailing
    # partial block (if any) is padded on read and masked on write by Pallas.
    assert lane_tile % 128 == 0
    td = d if d <= lane_tile else lane_tile
    grid = (pl.cdiv(d, td),)
    return pl.pallas_call(
        _weighted_sum_rows_kernel,
        out_shape=jax.ShapeDtypeStruct((1, d), jnp.float32),
        grid=grid,
        in_specs=[
            pl.BlockSpec(memory_space=pltpu.MemorySpace.SMEM),
            pl.BlockSpec((n, td), lambda i: (0, i)),
        ],
        out_specs=pl.BlockSpec((1, td), lambda i: (0, i)),
        compiler_params=pltpu.CompilerParams(dimension_semantics=("parallel",)),
        cost_estimate=_cost(n, d, g.dtype),
    )(weight, g)


def weighted_prompt_forward(weight, graph_embedding, *, lane_tile=65536):
    """weight: (1, N), graph_embedding: (N, D) -> (1, D) f32 (== torch.mm)."""
    n, d = graph_embedding.shape
    assert weight.shape == (1, n)
    weight = weight.astype(jnp.float32)        # tiny; big array stays native dtype
    if d % 128 == 0:
        return _forward_dense(weight, graph_embedding, n, d)
    return _forward_rows(weight, graph_embedding, n, d, lane_tile)


def make_weight(weightednum=3):
    # Deterministic init matching reset_parameters(): [0.5, 0.4, 0.3, ...].
    base = jnp.array([0.5, 0.4, 0.3], dtype=jnp.float32)
    if weightednum <= 3:
        w = base[:weightednum]
    else:
        # TODO(synk): entries past index 2 are uninitialized in PyTorch; zeros here.
        w = jnp.concatenate([base, jnp.zeros((weightednum - 3,), jnp.float32)])
    return w.reshape(1, weightednum)


if __name__ == "__main__":
    weightednum = 3
    key = jax.random.PRNGKey(0)
    k0, k1, k2, k3 = jax.random.split(key, 4)
    weight = make_weight(weightednum)

    # Case 1: module-sized shapes (N=3, D=32) -> lane-row path, single block.
    g1 = jax.random.normal(k0, (weightednum, 32), dtype=jnp.float32)
    out1 = jax.block_until_ready(weighted_prompt_forward(weight, g1))
    assert out1.shape == (1, 32)
    assert jnp.allclose(out1, weight @ g1, atol=1e-5, rtol=1e-5)

    # Case 2: 128-aligned D -> sublane-dense (N, S, 128) path, 2-step grid.
    g2 = jax.random.normal(k1, (weightednum, 4096), dtype=jnp.float32)
    out2 = jax.block_until_ready(weighted_prompt_forward(weight, g2))
    assert out2.shape == (1, 4096)
    assert jnp.allclose(out2, weight @ g2, atol=1e-5, rtol=1e-5)

    # Case 3: 128-aligned D where the S-tile does not divide S -> masked tail.
    g3 = jax.random.normal(k2, (weightednum, 3072), dtype=jnp.float32)
    out3 = jax.block_until_ready(weighted_prompt_forward(weight, g3))
    assert out3.shape == (1, 3072)
    assert jnp.allclose(out3, weight @ g3, atol=1e-5, rtol=1e-5)

    # Case 4: bf16 embedding streamed in native dtype, cast + f32 accum in-kernel.
    g4 = jax.random.normal(k3, (weightednum, 300), dtype=jnp.bfloat16)
    out4 = jax.block_until_ready(weighted_prompt_forward(weight, g4))
    ref4 = weight @ g4.astype(jnp.float32)
    assert out4.shape == (1, 300)
    assert jnp.allclose(out4, ref4, atol=3e-2, rtol=3e-2)

    print("KERNEL_OK")
</pallas_src>

<mosaic_0001>
module attributes {stable_mosaic.version = 11 : i64} {
  func.func @_weighted_sum_rows_kernel(%arg0: i32, %arg1: memref<1x3xf32, #tpu.memory_space<smem>>, %arg2: memref<3x32xf32, #tpu.memory_space<vmem>>, %arg3: memref<1x32xf32, #tpu.memory_space<vmem>>) attributes {dimension_semantics = [#tpu.dimension_semantics<parallel>], iteration_bounds = array<i64: 1>, scalar_prefetch = 0 : i64, scratch_operands = 0 : i64, tpu.core_type = #tpu.core_type<tc>, window_params = [{transform_indices = @transform_0, window_bounds = array<i64: 1, 3>}, {transform_indices = @transform_1, window_bounds = array<i64: 3, 32>}, {transform_indices = @transform_2, window_bounds = array<i64: 1, 32>}]} {
    %c0 = arith.constant 0 : index
    %c0_0 = arith.constant 0 : index
    %0 = memref.load %arg1[%c0, %c0_0] : memref<1x3xf32, #tpu.memory_space<smem>>
    %c0_1 = arith.constant 0 : index
    %c0_2 = arith.constant 0 : index
    %1 = vector.load %arg2[%c0_1, %c0_2] : memref<3x32xf32, #tpu.memory_space<vmem>>, vector<1x32xf32>
    %2 = vector.broadcast %0 : f32 to vector<1x32xf32>
    %3 = arith.mulf %2, %1 : vector<1x32xf32>
    %c0_3 = arith.constant 0 : index
    %c1 = arith.constant 1 : index
    %4 = memref.load %arg1[%c0_3, %c1] : memref<1x3xf32, #tpu.memory_space<smem>>
    %c1_4 = arith.constant 1 : index
    %c0_5 = arith.constant 0 : index
    %5 = vector.load %arg2[%c1_4, %c0_5] : memref<3x32xf32, #tpu.memory_space<vmem>>, vector<1x32xf32>
    %6 = vector.broadcast %4 : f32 to vector<1x32xf32>
    %7 = arith.mulf %6, %5 : vector<1x32xf32>
    %8 = arith.addf %3, %7 : vector<1x32xf32>
    %c0_6 = arith.constant 0 : index
    %c2 = arith.constant 2 : index
    %9 = memref.load %arg1[%c0_6, %c2] : memref<1x3xf32, #tpu.memory_space<smem>>
    %c2_7 = arith.constant 2 : index
    %c0_8 = arith.constant 0 : index
    %10 = vector.load %arg2[%c2_7, %c0_8] : memref<3x32xf32, #tpu.memory_space<vmem>>, vector<1x32xf32>
    %11 = vector.broadcast %9 : f32 to vector<1x32xf32>
    %12 = arith.mulf %11, %10 : vector<1x32xf32>
    %13 = arith.addf %8, %12 : vector<1x32xf32>
    %c0_9 = arith.constant 0 : index
    %c0_10 = arith.constant 0 : index
    %14 = vector.load %arg3[%c0_9, %c0_10] : memref<1x32xf32, #tpu.memory_space<vmem>>, vector<1x32xf32>
    tpu.vector_store %arg3[%c0_9, %c0_10], %13 {strides = array<i32>} : memref<1x32xf32, #tpu.memory_space<vmem>>, vector<1x32xf32>,
    return
  }
  func.func @transform_0(%arg0: i32) -> (i32, i32) {
    %c0_i32 = arith.constant 0 : i32
    %c0_i32_0 = arith.constant 0 : i32
    %c0_i32_1 = arith.constant 0 : i32
    return %c0_i32, %c0_i32_0 : i32, i32
  }
  func.func @transform_1(%arg0: i32) -> (i32, i32) {
    %c0_i32 = arith.constant 0 : i32
    %c0_i32_0 = arith.constant 0 : i32
    return %c0_i32, %arg0 : i32, i32
  }
  func.func @transform_2(%arg0: i32) -> (i32, i32) {
    %c0_i32 = arith.constant 0 : i32
    %c0_i32_0 = arith.constant 0 : i32
    return %c0_i32, %arg0 : i32, i32
  }
}

</mosaic_0001>

<bundles_post_ra>
// kernel: tpu_custom_call.1
= control target key start
LH: loop header
LB: loop body
LE: loop exit
PB: predicated region body
PF: predicated region fallthrough
CT: control target
= control target key end

     0   :  { %7 = vsyncpa [#allocation5], 0  ;;  %s153_s0 = inlined_call_operand.hbm [shape: f32[1,3], index: 0, kind: input, shape index: {}]   ;;  %s154_s1 = inlined_call_operand.hbm [shape: f32[3,32], index: 1, kind: input, shape index: {}]   ;;  %s155_s2 = inlined_call_operand.hbm [shape: f32[1,32], index: 2, kind: output, shape index: {}]  }
   0x1   :  { %8 = vsyncpa [#allocation3], 0 }
   0x2   :  { %9 = vsyncpa [#allocation4], 0  ;;  %s126_s9 = smov [#allocation2]   ;;  %s127_s12 = smov [#allocation6]  }
   0x3   :  { %17 = dma.hbm_to_smem %s153_s0, 16, %s126_s9, [#allocation5]  }
   0x4   :  { %s24_s13 = sshll.u32 %s127_s12, 4  ;;  %s25_s13 = int_to_ptr.vmem [resolvable:$true] %s24_s13 }
   0x5   :  { %s88_s14 = scalar_lea.vmem %s25_s13, 64  ;;  %p93_p1 = scmp.lt.s32.totalorder %s25_s13, %s25_s13 }
   0x6   :  { %p89_p0 = scmp.ne.s32.totalorder %s25_s13, %s88_s14  ;;  %p94_p2 = scmp.lt.s32.totalorder %s88_s14, %s88_s14 }
   0x8   :  { %p95_p3 = por %p94_p2, %p93_p1 }
   0xa   :  { %p96_p4 = pnand %p95_p3, %p89_p0 }
   0xc   :  { %99 = shalt.err (!%p96_p4)
}
   0xd   :  { %27 = dma.hbm_to_vmem [thread:$0]  %s154_s1, 64, %s25_s13, [#allocation3]  }
   0xe   :  { %120 = dma.done.wait [#allocation5], 16  }
   0xf   :  { %121 = vsyncadd [#allocation5], 4294967280 }
  0x10   :  { %122 = dma.done.wait [#allocation3], 64  }
  0x11   :  { %123 = vsyncadd [#allocation3], 4294967232 }
  0x12   :  { %34 = sfence }
  0x13   :  { %s35_s0 = sld [smem:[#allocation2]]  ;;  %v36_v0 = vld [vmem:[#allocation6] sm:$0x1]  ;;  %v40_v1 = vld [vmem:[#allocation6 + $0x1] sm:$0x1]  ;;  %s128_s19 = smov [#allocation7]  }
  0x14   :  { %s67_s17 = sld [smem:[#allocation2 + $0x1]]  ;;  %v45_v3 = vld [vmem:[#allocation6 + $0x2] sm:$0x1]  ;;  %s57_s20 = sshll.u32 %s128_s19, 4  ;;  %vm49_vm0 = vcmask 253952   ;;  %s58_s20 = int_to_ptr.vmem [resolvable:$true] %s57_s20 }
  0x15   :  { %s68_s18 = sld [smem:[#allocation2 + $0x2]]  ;;  %s100_s1 = scalar_lea.vmem %s58_s20, 16 }
  0x16   :  { %p101_p5 = scmp.ne.s32.totalorder %s58_s20, %s100_s1  ;;  %s104_s21 = scalar_lea.vmem %s58_s20, 32 }
  0x17   :  { %p105_p6 = scmp.lt.s32.totalorder %s58_s20, %s58_s20  ;;  %p106_p7 = scmp.lt.s32.totalorder %s104_s21, %s100_s1 }
  0x19   :  { %v37_v2 = vstv %s35_s0  ;;  %p107_p8 = por %p106_p7, %p105_p6 }
  0x1a   :  { %v38_v4 = vmul.f32 %v37_v2, %v36_v0  ;;  %v41_v5 = vstv %s67_s17 }
  0x1b   :  { %v42_v6 = vmul.f32 %v41_v5, %v40_v1  ;;  %v46_v7 = vstv %s68_s18  ;;  %p108_p9 = pnand %p107_p8, %p101_p5 }
  0x1c   :  { %v47_v8 = vmul.f32 %v46_v7, %v45_v3 }
  0x1d   :  { %v43_v9 = vadd.f32 %v42_v6, %v38_v4 }
  0x1f   :  { %v48_v10 = vadd.f32 %v47_v8, %v43_v9 }
  0x21   :  { %50 = vst.msk [vmem:[#allocation7] sm:$0x1] %vm49_vm0, %v48_v10 }
  0x22   :  { %111 = shalt.err (!%p108_p9)
}
  0x23   :  { %60 = dma.vmem_to_hbm [thread:$0]  %s58_s20, 16, %s155_s2, [#allocation4]  }
  0x24   :  { %124 = dma.done.wait [#allocation4], 16  }
  0x25   :  { %125 = vsyncadd [#allocation4], 4294967280 }
  0x26   :  { %64 = vsyncpa [#allocation3], 1 }
  0x27   :  { %65 = vsyncpa [#allocation4], 1 }
  0x28   :  { %66 = vsyncpa [#allocation5], 1 }

</bundles_post_ra>
